<compile_context>
chip_gen: v6e
topology: v6e:2x2x1
jax: 0.10.0
libtpu: 0.0.40
codegen_flags: <defaults>
</compile_context>

<pallas_src>
import functools

import jax
import jax.numpy as jnp
from jax.experimental import pallas as pl
from jax.experimental.pallas import tpu as pltpu


# ------------------------------ kernel -------------------------------------
def gcn_layer_kernel(a_ref, h_ref, w_ref, o_ref, *, a_first: bool):
    """One GCN layer on a row block: o = relu(A_tile @ H @ W), bf16 MXU ops."""
    a = a_ref[...]                                  # (tm, N)  bf16
    h = h_ref[...].astype(jnp.bfloat16)             # (N, F_in)
    w = w_ref[...]                                  # (F_in, F_out) bf16
    if a_first:
        # (A @ H) @ W  -- cheaper when F_in <= F_out, and row-tiles for free.
        ah = jnp.dot(a, h, preferred_element_type=jnp.float32)
        pre = jnp.dot(ah.astype(jnp.bfloat16), w,
                      preferred_element_type=jnp.float32)
    else:
        # A @ (H @ W)  -- cheaper when F_in > F_out (H@W recompute per row
        # block is accepted; small vs. the N^2 term).
        hw = jnp.dot(h, w, preferred_element_type=jnp.float32)
        pre = jnp.dot(a, hw.astype(jnp.bfloat16),
                      preferred_element_type=jnp.float32)
    o_ref[...] = jnp.maximum(pre, 0.0).astype(o_ref.dtype)


# ------------------------------ wrapper ------------------------------------
def _gcn_layer(a_bf, h, w_bf, *, block_rows=128):
    n = a_bf.shape[0]
    f_in, f_out = w_bf.shape
    tm = block_rows if (n % block_rows == 0) else n
    grid = (n // tm,)
    a_first = f_in <= f_out

    if a_first:
        flops = 2 * (n * n * f_in + n * f_in * f_out)
    else:
        flops = 2 * (n * f_in * f_out + n * n * f_out)
    bytes_accessed = (a_bf.size * a_bf.dtype.itemsize
                      + h.size * h.dtype.itemsize
                      + w_bf.size * w_bf.dtype.itemsize
                      + n * f_out * 4)

    kernel = functools.partial(gcn_layer_kernel, a_first=a_first)
    return pl.pallas_call(
        kernel,
        out_shape=jax.ShapeDtypeStruct((n, f_out), jnp.float32),
        grid=grid,
        in_specs=[
            pl.BlockSpec((tm, n), lambda i: (i, 0)),        # A row tile
            pl.BlockSpec((n, f_in), lambda i: (0, 0)),      # H (resident)
            pl.BlockSpec((f_in, f_out), lambda i: (0, 0)),  # W (resident)
        ],
        out_specs=pl.BlockSpec((tm, f_out), lambda i: (i, 0)),
        compiler_params=pltpu.CompilerParams(
            dimension_semantics=("parallel",),               # 2 TCs on v7x
            vmem_limit_bytes=48 * 1024 * 1024,
        ),
        cost_estimate=pl.CostEstimate(
            flops=flops, transcendentals=0, bytes_accessed=bytes_accessed),
    )(a_bf, h, w_bf)


def sp_gcn_forward(a, x, weights, *, block_rows=128):
    """weights: tuple of (F_in, F_out) matrices, W0 first (as in self.w_list)."""
    a_bf = a.astype(jnp.bfloat16)                    # cast once, reused per layer
    h = x
    for w in weights:
        h = _gcn_layer(a_bf, h, w.astype(jnp.bfloat16), block_rows=block_rows)
    return h


# --------------------------- pure-JAX references ----------------------------
def reference_forward_f32(a, x, weights):
    """Exact module semantics (dense Ahat, ReLU), full f32."""
    h = x
    for w in weights:
        h = jnp.maximum(a @ (h @ w), 0.0)
    return h


def reference_forward_bf16(a, x, weights):
    """Mirrors the kernel's bf16/f32 numerics and per-layer association."""
    h = x
    a_bf = a.astype(jnp.bfloat16)
    for w in weights:
        f_in, f_out = w.shape
        h_bf = h.astype(jnp.bfloat16)
        w_bf = w.astype(jnp.bfloat16)
        if f_in <= f_out:
            ah = jnp.dot(a_bf, h_bf, preferred_element_type=jnp.float32)
            pre = jnp.dot(ah.astype(jnp.bfloat16), w_bf,
                          preferred_element_type=jnp.float32)
        else:
            hw = jnp.dot(h_bf, w_bf, preferred_element_type=jnp.float32)
            pre = jnp.dot(a_bf, hw.astype(jnp.bfloat16),
                          preferred_element_type=jnp.float32)
        h = jnp.maximum(pre, 0.0)
    return h


if __name__ == "__main__":
    # Small config consistent with the module:
    #   N nodes, feats_per_node -> layer_1_feats -> layer_2_feats, num_layers=2.
    # N=256 with 128-row blocks exercises the "parallel" row grid; F1/F2 are
    # multiples of 128 so all stores are lane-dense.  F0=32 stays unpadded
    # because layer 0 uses the (A@X)@W0 association.
    N = 256            # nodes
    F0 = 32            # args.feats_per_node
    F1 = 128           # args.layer_1_feats
    F2 = 128           # args.layer_2_feats
    NUM_LAYERS = 2     # args.num_layers

    key = jax.random.PRNGKey(0)
    keys = jax.random.split(key, 2 + NUM_LAYERS)

    # Dense normalized-ish adjacency (stand-in for the sparse Ahat) + features.
    a = jax.random.uniform(keys[0], (N, N), jnp.float32) / N
    x = jax.random.normal(keys[1], (N, F0), jnp.float32)

    # GCN weights: W0 (F0,F1); subsequent layers (F1,F2), matching self.w_list.
    weights = []
    f_in = F0
    for i in range(NUM_LAYERS):
        f_out = F1 if i == 0 else F2
        w = jax.random.normal(keys[2 + i], (f_in, f_out), jnp.float32) * 0.1
        weights.append(w)
        f_in = f_out
    weights = tuple(weights)

    out = jax.block_until_ready(sp_gcn_forward(a, x, weights))

    ref_bf16 = reference_forward_bf16(a, x, weights)   # same numerics as kernel
    ref_f32 = reference_forward_f32(a, x, weights)     # module semantics

    assert out.shape == (N, F2), out.shape
    assert jnp.allclose(out, ref_bf16, atol=1e-2, rtol=1e-2), (
        float(jnp.max(jnp.abs(out - ref_bf16))))
    assert jnp.allclose(out, ref_f32, atol=1e-1, rtol=1e-1), (
        float(jnp.max(jnp.abs(out - ref_f32))))
    print("KERNEL_OK")
</pallas_src>

<mosaic_0001>
module attributes {stable_mosaic.version = 11 : i64} {
  func.func @gcn_layer_kernel(%arg0: i32, %arg1: memref<128x256xbf16, #tpu.memory_space<vmem>>, %arg2: memref<256x32xf32, #tpu.memory_space<vmem>>, %arg3: memref<32x128xbf16, #tpu.memory_space<vmem>>, %arg4: memref<128x128xf32, #tpu.memory_space<vmem>>) attributes {dimension_semantics = [#tpu.dimension_semantics<parallel>], iteration_bounds = array<i64: 2>, scalar_prefetch = 0 : i64, scratch_operands = 0 : i64, tpu.core_type = #tpu.core_type<tc>, window_params = [{transform_indices = @transform_0, window_bounds = array<i64: 128, 256>}, {pipeline_mode = #tpu.pipeline_mode<synchronous>, transform_indices = @transform_1, window_bounds = array<i64: 256, 32>}, {pipeline_mode = #tpu.pipeline_mode<synchronous>, transform_indices = @transform_2, window_bounds = array<i64: 32, 128>}, {transform_indices = @transform_3, window_bounds = array<i64: 128, 128>}]} {
    %c0 = arith.constant 0 : index
    %c0_0 = arith.constant 0 : index
    %0 = vector.load %arg1[%c0, %c0_0] : memref<128x256xbf16, #tpu.memory_space<vmem>>, vector<128x256xbf16>
    %c0_1 = arith.constant 0 : index
    %c0_2 = arith.constant 0 : index
    %1 = vector.load %arg2[%c0_1, %c0_2] : memref<256x32xf32, #tpu.memory_space<vmem>>, vector<256x32xf32>
    %2 = arith.truncf %1 : vector<256x32xf32> to vector<256x32xbf16>
    %c0_3 = arith.constant 0 : index
    %c0_4 = arith.constant 0 : index
    %3 = vector.load %arg3[%c0_3, %c0_4] : memref<32x128xbf16, #tpu.memory_space<vmem>>, vector<32x128xbf16>
    %cst = arith.constant dense<0.000000e+00> : vector<128x32xf32>
    %4 = tpu.matmul %0, %2, %cst {dimension_numbers = #tpu.dot_dimension_numbers<[1], [0], [0], [1], [0, 0, 1, 1], [], []>} : vector<128x256xbf16>, vector<256x32xbf16>, vector<128x32xf32> -> vector<128x32xf32>
    %5 = arith.truncf %4 : vector<128x32xf32> to vector<128x32xbf16>
    %cst_5 = arith.constant dense<0.000000e+00> : vector<128x128xf32>
    %6 = tpu.matmul %5, %3, %cst_5 {dimension_numbers = #tpu.dot_dimension_numbers<[1], [0], [0], [1], [0, 0, 1, 1], [], []>} : vector<128x32xbf16>, vector<32x128xbf16>, vector<128x128xf32> -> vector<128x128xf32>
    %cst_6 = arith.constant 0.000000e+00 : f32
    %7 = vector.broadcast %cst_6 : f32 to vector<128x128xf32>
    %8 = arith.maximumf %6, %7 : vector<128x128xf32>
    %c0_7 = arith.constant 0 : index
    %c0_8 = arith.constant 0 : index
    %9 = vector.load %arg4[%c0_7, %c0_8] : memref<128x128xf32, #tpu.memory_space<vmem>>, vector<128x128xf32>
    tpu.vector_store %arg4[%c0_7, %c0_8], %8 {strides = array<i32>} : memref<128x128xf32, #tpu.memory_space<vmem>>, vector<128x128xf32>,
    return
  }
  func.func @transform_0(%arg0: i32) -> (i32, i32) {
    %c0_i32 = arith.constant 0 : i32
    %c0_i32_0 = arith.constant 0 : i32
    return %arg0, %c0_i32 : i32, i32
  }
  func.func @transform_1(%arg0: i32) -> (i32, i32) {
    %c0_i32 = arith.constant 0 : i32
    %c0_i32_0 = arith.constant 0 : i32
    %c0_i32_1 = arith.constant 0 : i32
    return %c0_i32, %c0_i32_0 : i32, i32
  }
  func.func @transform_2(%arg0: i32) -> (i32, i32) {
    %c0_i32 = arith.constant 0 : i32
    %c0_i32_0 = arith.constant 0 : i32
    %c0_i32_1 = arith.constant 0 : i32
    return %c0_i32, %c0_i32_0 : i32, i32
  }
  func.func @transform_3(%arg0: i32) -> (i32, i32) {
    %c0_i32 = arith.constant 0 : i32
    %c0_i32_0 = arith.constant 0 : i32
    return %arg0, %c0_i32 : i32, i32
  }
}

</mosaic_0001>

<bundles_post_ra>
// kernel: tpu_custom_call.1
= control target key start
LH: loop header
LB: loop body
LE: loop exit
PB: predicated region body
PF: predicated region fallthrough
CT: control target
= control target key end

     0   :  { %8 = vsyncpa [#allocation3], 0  ;;  %s1226_s0 = inlined_call_operand.vmem [shape: bf16[256,256], index: 0, kind: input, shape index: {}]   ;;  %s1227_s1 = inlined_call_operand.vmem [shape: f32[256,32], index: 1, kind: input, shape index: {}]   ;;  %s1228_s2 = inlined_call_operand.vmem [shape: bf16[32,128], index: 2, kind: input, shape index: {}]   ;;  %s1229_s3 = inlined_call_operand.hbm [shape: f32[256,128], index: 3, kind: output, shape index: {}]  }
   0x1   :  { %10 = vsyncpa [#allocation3 + $0x1], 0  ;;  %s974_s12 = smov 0   ;;  %s976_s13 = smov 0  }
   0x2   :  { %s978_s14 = smov 0   ;;  %s980_s15 = smov 0  }
   0x3 LB: > { %s995_s16 = sadd.s32 4294967295, %s949_s15   ;;  %s671_s17 = sadd.s32 4294967294, %s949_s15   ;;  %s949_s15 = sphi %s980_s15, %s1235_s15   ;;  %s945_s14 = sphi %s978_s14, %s1234_s14   ;;  %s941_s13 = sphi %s976_s13, %s1233_s13   ;;  %s937_s12 = sphi %s974_s12, %s1232_s12  }
   0x4   : > { %s999_s18 = sadd.s32 1, %s949_s15   ;;  %s91_s19 = sadd.s32 1, %s945_s14 }
   0x5   : > { %s88_s20 = ssub.s32 %s949_s15, %s999_s18  ;;  %p101_p0 = scmp.ne.s32.totalorder %s945_s14, %s941_s13 }
   0x6   : > { %p89_p1 = scmp.eq.s32.totalorder %s88_s20, 0  ;;  %p102_p2 = scmp.eq.s32.totalorder %s995_s16, 1 }
   0x7   : > { %p107_p3 = scmp.ne.s32.totalorder %s941_s13, %s937_s12  ;;  %p108_p4 = scmp.eq.s32.totalorder %s671_s17, 1 }
   0x8   : > { %s1010_s21 = scalar_select %p89_p1, %s945_s14, %s91_s19  }
   0x9   : > { %p1012_p5 = por %p102_p2, %p101_p0  ;;  %p1016_p6 = por %p108_p4, %p107_p3 }
   0xa   : > { %p674_p7 = scmp.ge.s32.totalorder %s949_s15, 1  ;;  %p142_p8 = scmp.lt.s32.totalorder %s949_s15, 3 }
   0xc   : > { %p143_p9 = pnand %p674_p7, %p142_p8 }
   0xd   : > { %s676_s30 = sshll.u32 (!%p143_p9), %s995_s16, 4  ;;  %s711_s29 = sshll.u32 (!%p143_p9), %s995_s16, 11 }
   0xe   : > { %146 = sbr.rel (%p143_p9) target bundleno = 520 (0x208), region = 32  ;;  %p168_p10 = scmp.lt.s32.totalorder (!%p143_p9), %s676_s30, 31 }
   0xf   : > { %s1178_s7 = scalar_lea.hbm (!%p143_p9), %s1229_s3, %s711_s29  ;;  %s951_s9 = smov (!%p143_p9), [#allocation2]  }
  0x10   : > { %s893_s10 = sshll.u32 (!%p143_p9), %s951_s9, 4  ;;  %s894_s10 = int_to_ptr.vmem [resolvable:$false] %s893_s10 }
  0x11   : > { %s895_s11 = scalar_lea.vmem (!%p143_p9), %s894_s10, 4096 }
  0x13   : > { %v222_v0 = vld [vmem:[%s1227_s1 + $0xf0] sm:$0xff]  ;;  %v223_v1 = vld [vmem:[%s1227_s1 + $0xf8] sm:$0xff]  ;;  %v220_v5 = vld [vmem:[%s1227_s1 + $0xe0] sm:$0xff]  ;;  %s1237_s30 = smov (!%p168_p10, %s676_s30), 31  ;;  %vm441_vm0 = vcmask 261120  }
  0x14   : > { %v206_v2 = vld [vmem:[%s1227_s1 + $0x70] sm:$0xff]  ;;  %v239_v3 = vpack.c.bf16 %v223_v1, %v222_v0  ;;  %v207_v4 = vld [vmem:[%s1227_s1 + $0x78] sm:$0xff]  ;;  %v221_v6 = vld [vmem:[%s1227_s1 + $0xe8] sm:$0xff]  ;;  %s710_s5 = sshll.u32 %s1237_s30, 3 }
  0x15   : > { %v231_v7 = vpack.c.bf16 %v207_v4, %v206_v2  ;;  %v238_v8 = vpack.c.bf16 %v221_v6, %v220_v5  ;;  %v204_v9 = vld [vmem:[%s1227_s1 + $0x60] sm:$0xff]  ;;  %v205_v10 = vld [vmem:[%s1227_s1 + $0x68] sm:$0xff]  ;;  %v218_v11 = vld [vmem:[%s1227_s1 + $0xd0] sm:$0xff]  ;;  %s1068_s17 = scalar_lea.vmem %s1226_s0, %s710_s5 }
  0x16   : > { %712 = vmatprep.subr.bf16.mxu0 %v239_v3  ;;  %v219_v12 = vld [vmem:[%s1227_s1 + $0xd8] sm:$0xff]  ;;  %806 = vmatprep.subr.bf16.mxu1 %v239_v3  ;;  %v230_v13 = vpack.c.bf16 %v205_v10, %v204_v9  ;;  %v202_v15 = vld [vmem:[%s1227_s1 + $0x50] sm:$0xff]  ;;  %v216_v17 = vld [vmem:[%s1227_s1 + $0xc0] sm:$0xff] }
  0x17   : > { %713 = vmatpush3.bf16.msra.mxu0 %v231_v7  ;;  %814 = vmatpush3.bf16.msra.mxu1 %v231_v7  ;;  %v237_v14 = vpack.c.bf16 %v219_v12, %v218_v11  ;;  %v203_v16 = vld [vmem:[%s1227_s1 + $0x58] sm:$0xff]  ;;  %v217_v18 = vld [vmem:[%s1227_s1 + $0xc8] sm:$0xff]  ;;  %v200_v21 = vld [vmem:[%s1227_s1 + $0x40] sm:$0xff] }
  0x18   : > { %714 = vmatprep.subr.bf16.mxu0 %v238_v8  ;;  %807 = vmatprep.subr.bf16.mxu1 %v238_v8  ;;  %v229_v19 = vpack.c.bf16 %v203_v16, %v202_v15  ;;  %v236_v20 = vpack.c.bf16 %v217_v18, %v216_v17  ;;  %v201_v22 = vld [vmem:[%s1227_s1 + $0x48] sm:$0xff]  ;;  %v214_v23 = vld [vmem:[%s1227_s1 + $0xb0] sm:$0xff]  ;;  %v215_v24 = vld [vmem:[%s1227_s1 + $0xb8] sm:$0xff] }
  0x19   : > { %v865_v25 = vld [vmem:[%s1068_s17 + $0x4] ss:$8 sps:$4 sm:$0xff]   ;;  %v228_v26 = vpack.c.bf16 %v201_v22, %v200_v21  ;;  %v198_v27 = vld [vmem:[%s1227_s1 + $0x30] sm:$0xff]  ;;  %v235_v28 = vpack.c.bf16 %v215_v24, %v214_v23  ;;  %v199_v29 = vld [vmem:[%s1227_s1 + $0x38] sm:$0xff] }
  0x1a   : > { %356 = vmatprep.mubr.bf16.mxu0 %v865_v25  ;;  %v212_v30 = vld [vmem:[%s1227_s1 + $0xa0] sm:$0xff]  ;;  %v213_v31 = vld [vmem:[%s1227_s1 + $0xa8] sm:$0xff]  ;;  %v227_v33 = vpack.c.bf16 %v199_v29, %v198_v27  ;;  %v210_v36 = vld [vmem:[%s1227_s1 + $0x90] sm:$0xff] }
  0x1b   : > { %715 = vmatpush3.bf16.msra.mxu0 %v230_v13  ;;  %815 = vmatpush3.bf16.msra.mxu1 %v230_v13  ;;  %v196_v32 = vld [vmem:[%s1227_s1 + $0x20] sm:$0xff]  ;;  %v197_v34 = vld [vmem:[%s1227_s1 + $0x28] sm:$0xff]  ;;  %v234_v35 = vpack.c.bf16 %v213_v31, %v212_v30  ;;  %v211_v37 = vld [vmem:[%s1227_s1 + $0x98] sm:$0xff] }
  0x1c   : > { %716 = vmatprep.subr.bf16.mxu0 %v237_v14  ;;  %808 = vmatprep.subr.bf16.mxu1 %v237_v14  ;;  %v880_v38 = vld [vmem:[%s1068_s17 + $0x64] ss:$8 sps:$4 sm:$0xff]   ;;  %v194_v39 = vld [vmem:[%s1227_s1 + $0x10] sm:$0xff]  ;;  %v226_v40 = vpack.c.bf16 %v197_v34, %v196_v32  ;;  %v195_v41 = vld [vmem:[%s1227_s1 + $0x18] sm:$0xff]  ;;  %v233_v42 = vpack.c.bf16 %v211_v37, %v210_v36 }
  0x1d   : > { %v208_v43 = vld [vmem:[%s1227_s1 + $0x80] sm:$0xff]  ;;  %v209_v44 = vld [vmem:[%s1227_s1 + $0x88] sm:$0xff]  ;;  %404 = vmatprep.mubr.bf16.mxu1 %v880_v38  ;;  %v225_v45 = vpack.c.bf16 %v195_v41, %v194_v39  ;;  %v866_v52 = vld [vmem:[%s1068_s17 + $0x14] ss:$8 sps:$4 sm:$0xff]  }
  0x1e   : > { %v232_v46 = vpack.c.bf16 %v209_v44, %v208_v43  ;;  %v192_v47 = vld [vmem:[%s1227_s1] sm:$0xff]  ;;  %v193_v48 = vld [vmem:[%s1227_s1 + $0x8] sm:$0xff]  ;;  %v884_v53 = vld [vmem:[%s1068_s17 + $0x74] ss:$8 sps:$4 sm:$0xff]  }
  0x1f   : > { %717 = vmatpush3.bf16.msra.mxu0 %v229_v19  ;;  %816 = vmatpush3.bf16.msra.mxu1 %v229_v19  ;;  %v224_v49 = vpack.c.bf16 %v193_v48, %v192_v47  ;;  %v863_v50 = vld [vmem:[%s1068_s17] ss:$8 sps:$4 sm:$0xff]   ;;  %v868_v54 = vld [vmem:[%s1068_s17 + $0x10] ss:$8 sps:$4 sm:$0xff]   ;;  %v869_v56 = vld [vmem:[%s1068_s17 + $0x24] ss:$8 sps:$4 sm:$0xff]  }
  0x20   : > { %718 = vmatprep.subr.bf16.mxu0 %v236_v20  ;;  %809 = vmatprep.subr.bf16.mxu1 %v236_v20  ;;  %v878_v51 = vld [vmem:[%s1068_s17 + $0x60] ss:$8 sps:$4 sm:$0xff]   ;;  %v886_v55 = vld [vmem:[%s1068_s17 + $0x70] ss:$8 sps:$4 sm:$0xff]   ;;  %v872_v58 = vld [vmem:[%s1068_s17 + $0x34] ss:$8 sps:$4 sm:$0xff]  }
  0x21   : > { %v871_v57 = vld [vmem:[%s1068_s17 + $0x20] ss:$8 sps:$4 sm:$0xff]   ;;  %v874_v59 = vld [vmem:[%s1068_s17 + $0x30] ss:$8 sps:$4 sm:$0xff]   ;;  %v875_v60 = vld [vmem:[%s1068_s17 + $0x44] ss:$8 sps:$4 sm:$0xff]  }
  0x22   : > { %v877_v61 = vld [vmem:[%s1068_s17 + $0x40] ss:$8 sps:$4 sm:$0xff]   ;;  %v881_v62 = vld [vmem:[%s1068_s17 + $0x54] ss:$8 sps:$4 sm:$0xff]   ;;  %v883_v63 = vld [vmem:[%s1068_s17 + $0x50] ss:$8 sps:$4 sm:$0xff]  }
  0x23   : > { %719 = vmatpush3.bf16.msra.mxu0 %v228_v26  ;;  %817 = vmatpush3.bf16.msra.mxu1 %v228_v26  ;;  %v887_v0 = vld [vmem:[%s1228_s2 + $0x8] sm:$0xff]   ;;  %v888_v1 = vld [vmem:[%s1228_s2] sm:$0xff]   ;;  %s164_s17 = sand.u32 1, %s941_s13  }
  0x24   : > { %720 = vmatprep.subr.bf16.mxu0 %v235_v28  ;;  %810 = vmatprep.subr.bf16.mxu1 %v235_v28  ;;  %s675_s27 = sshll.u32 %s164_s17, 7  ;;  %s1186_s16 = scalar_lea.sflag [#allocation3], %s164_s17 }
  0x25   : > { %s1157_s28 = scalar_lea.vmem [#allocation2], %s675_s27 }
  0x26   : > { %s609_s4 = sshll.u32 %s1157_s28, 4  ;;  %s1180_s4 = int_to_ptr.vmem [resolvable:$true] %s609_s4 }
  0x27   : > { %721 = vmatpush3.bf16.msra.mxu0 %v227_v33  ;;  %818 = vmatpush3.bf16.msra.mxu1 %v227_v33  ;;  %s889_s8 = scalar_lea.vmem %s1180_s4, 2048  ;;  %p896_p0 = scmp.lt.s32.totalorder %s1180_s4, %s894_s10 }
  0x28   : > { %722 = vmatprep.subr.bf16.mxu0 %v234_v35  ;;  %811 = vmatprep.subr.bf16.mxu1 %v234_v35  ;;  %p890_p11 = scmp.ne.s32.totalorder %s1180_s4, %s889_s8  ;;  %p897_p1 = scmp.lt.s32.totalorder %s895_s11, %s889_s8 }
  0x2a   : > { %p891_p12 = pnand %p890_p11, %p1012_p5  ;;  %p898_p2 = por %p897_p1, %p896_p0 }
  0x2b   : > { %723 = vmatpush3.bf16.msra.mxu0 %v226_v40  ;;  %819 = vmatpush3.bf16.msra.mxu1 %v226_v40 }
  0x2c   : > { %724 = vmatprep.subr.bf16.mxu0 %v233_v42  ;;  %812 = vmatprep.subr.bf16.mxu1 %v233_v42  ;;  %p892_p13 = pneg %p891_p12 }
  0x2e   : > { %p899_p3 = pnand %p898_p2, %p892_p13 }
  0x2f   : > { %725 = vmatpush3.bf16.msra.mxu0 %v225_v45  ;;  %820 = vmatpush3.bf16.msra.mxu1 %v225_v45 }
  0x30   : > { %726 = vmatprep.subr.bf16.mxu0 %v232_v46  ;;  %813 = vmatprep.subr.bf16.mxu1 %v232_v46 }
  0x33   : > { %727 = vmatpush3.bf16.msra.mxu0 %v224_v49  ;;  %821 = vmatpush3.bf16.msra.mxu1 %v224_v49 }
  0x34   : > { %786 = vmatprep.subr.bf16.mxu1 %v887_v0 }
  0x36   : > { %357 = vmatmul.mubr.bf16.vlgmr.msra.gmra.mxu0 %v863_v50  ;;  %405 = vmatmul.mubr.bf16.vlgmr.msra.gmra.mxu1 %v878_v51 }
  0x37   : > { %364 = vmatprep.mubr.bf16.mxu0 %v866_v52  ;;  %412 = vmatprep.mubr.bf16.mxu1 %v884_v53 }
  0x38   : > { %787 = vmatpush3.bf16.msra.mxu1 %v887_v0 }
  0x39   : > { %788 = vmatprep.subr.bf16.mxu1 %v888_v1 }
  0x3c   : > { %789 = vmatpush3.bf16.msra.mxu1 %v888_v1 }
  0x3e   : > { %365 = vmatmul.mubr.bf16.gmra.mxu0 %v868_v54  ;;  %413 = vmatmul.mubr.bf16.gmra.mxu1 %v886_v55 }
  0x3f   : > { %372 = vmatprep.mubr.bf16.mxu0 %v869_v56 }
  0x46   : > { %373 = vmatmul.mubr.bf16.gmra.mxu0 %v871_v57 }
  0x47   : > { %380 = vmatprep.mubr.bf16.mxu0 %v872_v58 }
  0x4e   : > { %381 = vmatmul.mubr.bf16.gmra.mxu0 %v874_v59 }
  0x4f   : > { %388 = vmatprep.mubr.bf16.mxu0 %v875_v60 }
  0x56   : > { %389 = vmatmul.mubr.bf16.gmra.mxu0 %v877_v61 }
  0x57   : > { %396 = vmatprep.mubr.bf16.mxu0 %v881_v62 }
  0x5e   : > { %397 = vmatmul.mubr.bf16.gmra.mxu0 %v883_v63 }
  0xf6   : > { %v728_v2 = vpop.f32.mrf.mxu0  ;;  %v764_v20 = vpop.f32.mrf.mxu1 }
  0xf8   : > { %v729_v3 = vpop.f32.mrf.mxu0  ;;  %v765_v26 = vpop.f32.mrf.mxu1 }
  0xf9   : > { %v730_v6 = vadd.f32 %v729_v3, %v728_v2  ;;  %v766_v46 = vadd.f32 %v765_v26, %v764_v20 }
  0xfa   : > { %v731_v4 = vpop.f32.mrf.mxu0  ;;  %v767_v29 = vpop.f32.mrf.mxu1 }
  0xfc   : > { %v732_v5 = vpop.f32.mrf.mxu0  ;;  %v768_v35 = vpop.f32.mrf.mxu1 }
  0xfd   : > { %v733_v7 = vadd.f32 %v732_v5, %v731_v4  ;;  %v769_v47 = vadd.f32 %v768_v35, %v767_v29 }
  0xfe   : > { %v734_v8 = vpop.f32.mrf.mxu0  ;;  %v770_v38 = vpop.f32.mrf.mxu1 }
  0xff   : > { %v421_v9 = vpack.c.bf16 %v733_v7, %v730_v6  ;;  %v427_v53 = vpack.c.bf16 %v769_v47, %v766_v46 }
 0x100   : > { %v735_v10 = vpop.f32.mrf.mxu0  ;;  %v771_v44 = vpop.f32.mrf.mxu1 }
 0x101   : > { %790 = vmatprep.mubr.msk.bf16.mxu1 %vm441_vm0, %v421_v9  ;;  %v736_v13 = vadd.f32 %v735_v10, %v734_v8  ;;  %v772_v55 = vadd.f32 %v771_v44, %v770_v38 }
 0x102   : > { %v737_v11 = vpop.f32.mrf.mxu0  ;;  %v773_v49 = vpop.f32.mrf.mxu1 }
 0x104   : > { %v738_v12 = vpop.f32.mrf.mxu0  ;;  %v774_v54 = vpop.f32.mrf.mxu1 }
 0x105   : > { %v739_v14 = vadd.f32 %v738_v12, %v737_v11  ;;  %v775_v56 = vadd.f32 %v774_v54, %v773_v49 }
 0x106   : > { %v740_v15 = vpop.f32.mrf.mxu0 }
 0x107   : > { %v422_v16 = vpack.c.bf16 %v739_v14, %v736_v13  ;;  %v428_v57 = vpack.c.bf16 %v775_v56, %v772_v55 }
 0x108   : > { %v741_v17 = vpop.f32.mrf.mxu0 }
 0x109   : > { %791 = vmatmul.mubr.msk.bf16.vlgmr.msra.gmra.mxu1 %vm441_vm0, %v422_v16  ;;  %v742_v21 = vadd.f32 %v741_v17, %v740_v15 }
 0x10a   : > { %v743_v18 = vpop.f32.mrf.mxu0 }
 0x10c   : > { %v744_v19 = vpop.f32.mrf.mxu0 }
 0x10d   : > { %v745_v22 = vadd.f32 %v744_v19, %v743_v18 }
 0x10e   : > { %v746_v23 = vpop.f32.mrf.mxu0 }
 0x10f   : > { %v423_v24 = vpack.c.bf16 %v745_v22, %v742_v21 }
 0x110   : > { %v747_v25 = vpop.f32.mrf.mxu0 }
 0x111   : > { %794 = vmatprep.mubr.msk.bf16.mxu1 %vm441_vm0, %v423_v24  ;;  %v748_v30 = vadd.f32 %v747_v25, %v746_v23 }
 0x112   : > { %v749_v27 = vpop.f32.mrf.mxu0 }
 0x114   : > { %v750_v28 = vpop.f32.mrf.mxu0 }
 0x115   : > { %v751_v31 = vadd.f32 %v750_v28, %v749_v27 }
 0x116   : > { %v752_v32 = vpop.f32.mrf.mxu0 }
 0x117   : > { %v424_v33 = vpack.c.bf16 %v751_v31, %v748_v30 }
 0x118   : > { %v753_v34 = vpop.f32.mrf.mxu0 }
 0x119   : > { %795 = vmatmul.mubr.msk.bf16.gmra.mxu1 %vm441_vm0, %v424_v33  ;;  %v754_v39 = vadd.f32 %v753_v34, %v752_v32 }
 0x11a   : > { %v755_v36 = vpop.f32.mrf.mxu0 }
 0x11c   : > { %v756_v37 = vpop.f32.mrf.mxu0 }
 0x11d   : > { %v757_v40 = vadd.f32 %v756_v37, %v755_v36 }
 0x11e   : > { %v758_v41 = vpop.f32.mrf.mxu0 }
 0x11f   : > { %v425_v42 = vpack.c.bf16 %v757_v40, %v754_v39 }
 0x120   : > { %v759_v43 = vpop.f32.mrf.mxu0 }
 0x121   : > { %798 = vmatprep.mubr.msk.bf16.mxu1 %vm441_vm0, %v425_v42  ;;  %v760_v50 = vadd.f32 %v759_v43, %v758_v41 }
 0x122   : > { %v761_v45 = vpop.f32.mrf.mxu0 }
 0x124   : > { %v762_v48 = vpop.f32.mrf.mxu0 }
 0x125   : > { %v763_v51 = vadd.f32 %v762_v48, %v761_v45 }
 0x127   : > { %v426_v52 = vpack.c.bf16 %v763_v51, %v760_v50 }
 0x129   : > { %799 = vmatmul.mubr.msk.bf16.gmra.mxu1 %vm441_vm0, %v426_v52 }
 0x12a   : > { %802 = vmatprep.mubr.msk.bf16.mxu1 %vm441_vm0, %v427_v53 }
 0x131   : > { %803 = vmatmul.mubr.msk.bf16.gmra.mxu1 %vm441_vm0, %v428_v57 }
 0x1c9   : > { %v792_v58 = vpop.f32.mrf.mxu1 }
 0x1ca   : > { %v565_v59 = vmax.f32 %v792_v58, 0.0 }
 0x1cb   : > { %v500_v60 = vpop.f32.mrf.mxu1 }
 0x1cc   : > { %581 = vst [vmem:[%s1157_s28 + $0x10] sm:$0xff] %v565_v59  ;;  %v563_v61 = vmax.f32 %v500_v60, 0.0 }
 0x1cd   : > { %v793_v62 = vpop.f32.mrf.mxu1 }
 0x1ce   : > { %579 = vst [vmem:[%s1157_s28] sm:$0xff] %v563_v61  ;;  %v566_v63 = vmax.f32 %v793_v62, 0.0 }
 0x1cf   : > { %v503_v0 = vpop.f32.mrf.mxu1 }
 0x1d0   : > { %582 = vst [vmem:[%s1157_s28 + $0x18] sm:$0xff] %v566_v63  ;;  %v564_v1 = vmax.f32 %v503_v0, 0.0 }
 0x1d2   : > { %580 = vst [vmem:[%s1157_s28 + $0x8] sm:$0xff] %v564_v1 }
 0x1d9   : > { %v796_v2 = vpop.f32.mrf.mxu1 }
 0x1da   : > { %v569_v3 = vmax.f32 %v796_v2, 0.0 }
 0x1db   : > { %v516_v4 = vpop.f32.mrf.mxu1 }
 0x1dc   : > { %585 = vst [vmem:[%s1157_s28 + $0x30] sm:$0xff] %v569_v3  ;;  %v567_v5 = vmax.f32 %v516_v4, 0.0 }
 0x1dd   : > { %v797_v6 = vpop.f32.mrf.mxu1 }
 0x1de   : > { %583 = vst [vmem:[%s1157_s28 + $0x20] sm:$0xff] %v567_v5  ;;  %v570_v7 = vmax.f32 %v797_v6, 0.0 }
 0x1df   : > { %v519_v8 = vpop.f32.mrf.mxu1 }
 0x1e0   : > { %586 = vst [vmem:[%s1157_s28 + $0x38] sm:$0xff] %v570_v7  ;;  %v568_v9 = vmax.f32 %v519_v8, 0.0 }
 0x1e2   : > { %584 = vst [vmem:[%s1157_s28 + $0x28] sm:$0xff] %v568_v9 }
 0x1e9   : > { %v800_v10 = vpop.f32.mrf.mxu1 }
 0x1ea   : > { %v573_v11 = vmax.f32 %v800_v10, 0.0 }
 0x1eb   : > { %v532_v12 = vpop.f32.mrf.mxu1 }
 0x1ec   : > { %589 = vst [vmem:[%s1157_s28 + $0x50] sm:$0xff] %v573_v11  ;;  %v571_v13 = vmax.f32 %v532_v12, 0.0 }
 0x1ed   : > { %v801_v14 = vpop.f32.mrf.mxu1 }
 0x1ee   : > { %587 = vst [vmem:[%s1157_s28 + $0x40] sm:$0xff] %v571_v13  ;;  %v574_v15 = vmax.f32 %v801_v14, 0.0 }
 0x1ef   : > { %v535_v16 = vpop.f32.mrf.mxu1 }
 0x1f0   : > { %590 = vst [vmem:[%s1157_s28 + $0x58] sm:$0xff] %v574_v15  ;;  %v572_v17 = vmax.f32 %v535_v16, 0.0 }
 0x1f1   : > { %v804_v18 = vpop.f32.mrf.mxu1 }
 0x1f2   : > { %588 = vst [vmem:[%s1157_s28 + $0x48] sm:$0xff] %v572_v17  ;;  %v577_v19 = vmax.f32 %v804_v18, 0.0 }
 0x1f3   : > { %v548_v20 = vpop.f32.mrf.mxu1 }
 0x1f4   : > { %593 = vst [vmem:[%s1157_s28 + $0x70] sm:$0xff] %v577_v19  ;;  %v575_v21 = vmax.f32 %v548_v20, 0.0 }
 0x1f5   : > { %v805_v22 = vpop.f32.mrf.mxu1 }
 0x1f6   : > { %591 = vst [vmem:[%s1157_s28 + $0x60] sm:$0xff] %v575_v21  ;;  %v578_v23 = vmax.f32 %v805_v22, 0.0 }
 0x1f7   : > { %v551_v24 = vpop.f32.mrf.mxu1 }
 0x1f8   : > { %594 = vst [vmem:[%s1157_s28 + $0x78] sm:$0xff] %v578_v23  ;;  %v576_v25 = vmax.f32 %v551_v24, 0.0 }
 0x1fa   : > { %592 = vst [vmem:[%s1157_s28 + $0x68] sm:$0xff] %v576_v25 }
 0x1fb   : > { %902 = shalt.err (!%p899_p3)
}
 0x1fc   : > { %s903_s30 = scalar_lea.hbm %s1178_s7, 2048  ;;  %s907_s24 = scalar_lea.hbm %s1229_s3, 4096 }
 0x1fd   : > { %p904_p4 = scmp.ne.s32.totalorder %s1178_s7, %s903_s30  ;;  %p908_p9 = scmp.lt.s32.totalorder %s1178_s7, %s1229_s3 }
 0x1fe   : > { %p909_p10 = scmp.lt.s32.totalorder %s907_s24, %s903_s30 }
 0x1ff   : > { %p905_p7 = pnand %p904_p4, %p1012_p5 }
 0x200   : > { %p910_p11 = por %p909_p10, %p908_p9 }
 0x201   : > { %p906_p8 = pneg %p905_p7 }
 0x203   : > { %p911_p12 = pnand %p910_p11, %p906_p8 }
 0x205   : > { %914 = shalt.err (!%p911_p12)
}
 0x206   : > { %s952_s17 = smov 128   ;;  %s953_s27 = smov 8  }
 0x207   : > { %822 = dma.vmem_to_hbm [thread:$0]  (%p1012_p5), %s1180_s4, 2048, %s1178_s7, %s1186_s16, %s952_s17, %s952_s17, %s953_s27  }
 0x208 PF: > { %p828_p13 = scmp.ge.s32.totalorder %s949_s15, 2  ;;  %s624_s28 = sand.u32 1, %s937_s12  }
 0x209   : > { %s625_s29 = scalar_lea.sflag [#allocation3], %s624_s28 }
 0x20a   : > { %p825_p0 = pnand %p828_p13, %p1016_p6 }
 0x20c   : > { %p826_p1 = pneg %p825_p0 }
 0x20e   : > { %932 = dma.done.wait (%p826_p1), %s625_s29, 2048  }
 0x20f   : > { %934 = vsyncadd (%p826_p1), %s625_s29, 4294965248  ;;  %p13_p2 = scmp.ge.s32.totalorder %s999_s18, 4   ;;  %s1232_s12 = smov %s941_s13 }
 0x210   : > { %s1233_s13 = smov %s945_s14  ;;  %s1234_s14 = smov %s1010_s21 }
 0x211   : > { %s1235_s15 = smov %s999_s18  ;;  %15 = sbr.rel (!%p13_p2) target bundleno = 3 (0x3), region = 67 }
 0x216   :  { %630 = vsyncpa [#allocation3], 1 }
 0x217   :  { %632 = vsyncpa [#allocation3 + $0x1], 1 }

</bundles_post_ra>
